<compile_context>
chip_gen: v5e
topology: v5e:2x2
jax: 0.10.0
libtpu: 0.0.40
codegen_flags: <defaults>
</compile_context>

<pallas_src>
import jax
import jax.numpy as jnp
from jax.experimental import pallas as pl
from jax.experimental.pallas import tpu as pltpu


def _round_up(x, m):
    return ((x + m - 1) // m) * m


def _fused_head_kernel(x_ref, w_ref, b_ref, out_ref):
    # One fused MXU matmul for both heads (cls || obbox).
    # Cast the activation tile to the weight dtype in VMEM so a bf16 weight
    # path gets the full MXU bf16 rate (no wrapper-side cast / extra HBM pass).
    x = x_ref[...].astype(w_ref.dtype)
    acc = jnp.dot(x, w_ref[...], preferred_element_type=jnp.float32)
    # f32 accumulation + f32 bias add; store in the output dtype.
    out_ref[...] = (acc + b_ref[...]).astype(out_ref.dtype)


def prepare_predictor_params(w_cls, b_cls, w_obb, b_obb,
                             *, compute_dtype=jnp.float32):
    """Hoisted (once-per-model) parameter prep.

    Fuses the two Linear layers into a single (C, K_pad) weight laid out as
    (in, out) so the kernel does a plain x @ W, with the output width padded
    up to a multiple of 128 lanes.  Weights may be cast to bf16 for the MXU;
    the bias stays f32 (it is added to the f32 accumulator).
    """
    k_cls, c = w_cls.shape
    k_obb = w_obb.shape[0]
    k_total = k_cls + k_obb
    k_pad = _round_up(k_total, 128)

    w_fused = jnp.concatenate([w_cls.T, w_obb.T], axis=1)            # (C, k_total)
    w_fused = jnp.pad(w_fused, ((0, 0), (0, k_pad - k_total)))       # (C, k_pad)
    b_fused = jnp.concatenate([b_cls, b_obb])                        # (k_total,)
    b_fused = jnp.pad(b_fused, (0, k_pad - k_total)).reshape(1, k_pad)

    return dict(
        w=w_fused.astype(compute_dtype),
        b=b_fused.astype(jnp.float32),
        c=c, k_cls=k_cls, k_obb=k_obb, k_pad=k_pad,
    )


def rotated_faster_rcnn_predictor_fused(x, params, *, block_n=256):
    """Forward pass with pre-fused params. Returns (scores, obbox_deltas)."""
    if x.ndim == 4:
        assert x.shape[2:] == (1, 1), (
            f"x has the wrong shape, expecting the last two dimensions to be "
            f"[1,1] instead of {list(x.shape[2:])}")
    x2 = x.reshape(x.shape[0], -1)                     # flatten(start_dim=1)
    n, c = x2.shape
    assert c == params["c"], f"in_channels mismatch: {c} vs {params['c']}"
    k_cls, k_obb, k_pad = params["k_cls"], params["k_obb"], params["k_pad"]

    # Proposal tiling: block rows must be a multiple of 8 (sublane); pad N so
    # the block divides it exactly (no-op when already aligned), slice the pad
    # rows off afterwards.  The activation is NOT cast here — the kernel casts
    # the VMEM tile, avoiding an extra wrapper-side HBM pass for bf16 weights.
    bn = _round_up(min(block_n, _round_up(n, 8)), 8)
    n_pad = _round_up(n, bn)
    x2p = x2 if n_pad == n else jnp.pad(x2, ((0, n_pad - n), (0, 0)))

    grid = (n_pad // bn,)
    out = pl.pallas_call(
        _fused_head_kernel,
        out_shape=jax.ShapeDtypeStruct((n_pad, k_pad), x2.dtype),
        grid_spec=pltpu.PrefetchScalarGridSpec(
            num_scalar_prefetch=0,
            grid=grid,
            in_specs=[
                # Proposal tile: pipelined / double-buffered across the grid.
                pl.BlockSpec((bn, c), lambda i: (i, 0)),
                # Fused weight + bias: same block every step -> stay resident.
                pl.BlockSpec((c, k_pad), lambda i: (0, 0)),
                pl.BlockSpec((1, k_pad), lambda i: (0, 0)),
            ],
            out_specs=pl.BlockSpec((bn, k_pad), lambda i: (i, 0)),
        ),
        compiler_params=pltpu.CompilerParams(
            # Proposal axis is embarrassingly parallel -> shard across the
            # two TensorCores on v7x (no-op on single-TC v5e/v6e).
            dimension_semantics=("parallel",),
        ),
        cost_estimate=pl.CostEstimate(
            flops=2 * n_pad * c * k_pad,
            transcendentals=0,
            bytes_accessed=(x2p.size * x2p.dtype.itemsize
                            + params["w"].size * params["w"].dtype.itemsize
                            + params["b"].size * 4
                            + n_pad * k_pad * x2.dtype.itemsize),
        ),
    )(x2p, params["w"], params["b"])

    scores = out[:n, :k_cls]
    obbox_deltas = out[:n, k_cls:k_cls + k_obb]
    return scores, obbox_deltas


def rotated_faster_rcnn_predictor(x, w_cls, b_cls, w_obb, b_obb,
                                  *, block_n=256, compute_dtype=jnp.float32):
    """Convenience wrapper taking raw PyTorch-convention (out, in) weights.

    Prefer prepare_predictor_params() once + rotated_faster_rcnn_predictor_fused()
    per step so the transpose/concat/pad is not re-run every forward.
    """
    params = prepare_predictor_params(w_cls, b_cls, w_obb, b_obb,
                                      compute_dtype=compute_dtype)
    return rotated_faster_rcnn_predictor_fused(x, params, block_n=block_n)


if __name__ == "__main__":
    key = jax.random.PRNGKey(0)
    in_channels = 32
    num_classes = 8        # including background
    batch = 4              # number of proposals

    k_x, k_wc, k_bc, k_wo, k_bo = jax.random.split(key, 5)
    x = jax.random.normal(k_x, (batch, in_channels, 1, 1), dtype=jnp.float32)
    w_cls = jax.random.normal(k_wc, (num_classes, in_channels), jnp.float32) * 0.05
    b_cls = jax.random.normal(k_bc, (num_classes,), jnp.float32) * 0.05
    w_obb = jax.random.normal(k_wo, (num_classes * 6, in_channels), jnp.float32) * 0.05
    b_obb = jax.random.normal(k_bo, (num_classes * 6,), jnp.float32) * 0.05

    # Reference (same math as the PyTorch forward), pure JAX f32.
    x2 = x.reshape(batch, -1)
    ref_scores = x2 @ w_cls.T + b_cls
    ref_obbox = x2 @ w_obb.T + b_obb

    # --- f32 path: exact-semantics check ------------------------------------
    params_f32 = prepare_predictor_params(w_cls, b_cls, w_obb, b_obb)  # hoisted
    scores, obbox_deltas = rotated_faster_rcnn_predictor_fused(x, params_f32)
    jax.block_until_ready((scores, obbox_deltas))

    assert scores.shape == (batch, num_classes)
    assert obbox_deltas.shape == (batch, num_classes * 6)
    assert jnp.allclose(scores, ref_scores, atol=1e-5, rtol=1e-5)
    assert jnp.allclose(obbox_deltas, ref_obbox, atol=1e-5, rtol=1e-5)

    # --- bf16 fast path (full MXU rate; cast happens inside the kernel) ------
    params_bf16 = prepare_predictor_params(w_cls, b_cls, w_obb, b_obb,
                                           compute_dtype=jnp.bfloat16)
    scores_bf, obbox_bf = rotated_faster_rcnn_predictor_fused(x, params_bf16)
    jax.block_until_ready((scores_bf, obbox_bf))
    assert scores_bf.shape == (batch, num_classes)
    assert obbox_bf.shape == (batch, num_classes * 6)
    assert jnp.allclose(scores_bf, ref_scores, atol=5e-2, rtol=5e-2)
    assert jnp.allclose(obbox_bf, ref_obbox, atol=5e-2, rtol=5e-2)

    print("KERNEL_OK")
</pallas_src>

<mosaic_0001>
module attributes {stable_mosaic.version = 11 : i64} {
  func.func @_fused_head_kernel(%arg0: i32, %arg1: memref<8x32xf32, #tpu.memory_space<vmem>>, %arg2: memref<32x128xf32, #tpu.memory_space<vmem>>, %arg3: memref<1x128xf32, #tpu.memory_space<vmem>>, %arg4: memref<8x128xf32, #tpu.memory_space<vmem>>) attributes {dimension_semantics = [#tpu.dimension_semantics<parallel>], iteration_bounds = array<i64: 1>, scalar_prefetch = 0 : i64, scratch_operands = 0 : i64, tpu.core_type = #tpu.core_type<tc>, window_params = [{transform_indices = @transform_0, window_bounds = array<i64: 8, 32>}, {pipeline_mode = #tpu.pipeline_mode<synchronous>, transform_indices = @transform_1, window_bounds = array<i64: 32, 128>}, {pipeline_mode = #tpu.pipeline_mode<synchronous>, transform_indices = @transform_2, window_bounds = array<i64: 1, 128>}, {transform_indices = @transform_3, window_bounds = array<i64: 8, 128>}]} {
    %c0 = arith.constant 0 : index
    %c0_0 = arith.constant 0 : index
    %0 = vector.load %arg1[%c0, %c0_0] : memref<8x32xf32, #tpu.memory_space<vmem>>, vector<8x32xf32>
    %c0_1 = arith.constant 0 : index
    %c0_2 = arith.constant 0 : index
    %1 = vector.load %arg2[%c0_1, %c0_2] : memref<32x128xf32, #tpu.memory_space<vmem>>, vector<32x128xf32>
    %cst = arith.constant dense<0.000000e+00> : vector<8x128xf32>
    %2 = tpu.matmul %0, %1, %cst {dimension_numbers = #tpu.dot_dimension_numbers<[1], [0], [0], [1], [0, 0, 1, 1], [], []>} : vector<8x32xf32>, vector<32x128xf32>, vector<8x128xf32> -> vector<8x128xf32>
    %c0_3 = arith.constant 0 : index
    %c0_4 = arith.constant 0 : index
    %3 = vector.load %arg3[%c0_3, %c0_4] : memref<1x128xf32, #tpu.memory_space<vmem>>, vector<1x128xf32>
    %4 = vector.broadcast %3 : vector<1x128xf32> to vector<8x128xf32>
    %5 = arith.addf %2, %4 : vector<8x128xf32>
    %c0_5 = arith.constant 0 : index
    %c0_6 = arith.constant 0 : index
    %6 = vector.load %arg4[%c0_5, %c0_6] : memref<8x128xf32, #tpu.memory_space<vmem>>, vector<8x128xf32>
    tpu.vector_store %arg4[%c0_5, %c0_6], %5 {strides = array<i32>} : memref<8x128xf32, #tpu.memory_space<vmem>>, vector<8x128xf32>,
    return
  }
  func.func @transform_0(%arg0: i32) -> (i32, i32) {
    %c0_i32 = arith.constant 0 : i32
    %c0_i32_0 = arith.constant 0 : i32
    return %arg0, %c0_i32 : i32, i32
  }
  func.func @transform_1(%arg0: i32) -> (i32, i32) {
    %c0_i32 = arith.constant 0 : i32
    %c0_i32_0 = arith.constant 0 : i32
    %c0_i32_1 = arith.constant 0 : i32
    return %c0_i32, %c0_i32_0 : i32, i32
  }
  func.func @transform_2(%arg0: i32) -> (i32, i32) {
    %c0_i32 = arith.constant 0 : i32
    %c0_i32_0 = arith.constant 0 : i32
    %c0_i32_1 = arith.constant 0 : i32
    return %c0_i32, %c0_i32_0 : i32, i32
  }
  func.func @transform_3(%arg0: i32) -> (i32, i32) {
    %c0_i32 = arith.constant 0 : i32
    %c0_i32_0 = arith.constant 0 : i32
    return %arg0, %c0_i32 : i32, i32
  }
}

</mosaic_0001>

<bundles_post_ra>
// kernel: tpu_custom_call.1
= control target key start
LH: loop header
LB: loop body
LE: loop exit
PB: predicated region body
PF: predicated region fallthrough
CT: control target
= control target key end

     0   :  { %8 = vsyncpa [#allocation3], 0  ;;  %s219_s0 = inlined_call_operand.hbm [shape: f32[8,32], index: 0, kind: input, shape index: {}]   ;;  %s220_s1 = inlined_call_operand.hbm [shape: f32[32,128], index: 1, kind: input, shape index: {}]   ;;  %s221_s2 = inlined_call_operand.vmem [shape: f32[1,128], index: 2, kind: input, shape index: {}]   ;;  %s222_s3 = inlined_call_operand.hbm [shape: f32[8,128], index: 3, kind: output, shape index: {}]  }
   0x1   :  { %9 = vsyncpa [#allocation6], 0 }
   0x2   :  { %10 = vsyncpa [#allocation4], 0  ;;  %s16_s14 = sshll.u32 %s219_s0, 4  ;;  %s182_s15 = smov [#allocation2]   ;;  %s17_s14 = int_to_ptr.hbm [resolvable:$true] %s16_s14 }
   0x3   :  { %s18_s16 = sshll.u32 %s182_s15, 4  ;;  %s26_s19 = sshll.u32 %s220_s1, 4  ;;  %s19_s16 = int_to_ptr.vmem [resolvable:$true] %s18_s16  ;;  %s27_s19 = int_to_ptr.hbm [resolvable:$true] %s26_s19 }
   0x4   :  { %21 = dma.hbm_to_vmem [thread:$0]  %s17_s14, 128, %s19_s16, [#allocation3]  }
   0x5   :  { %s183_s20 = smov [#allocation5]   ;;  %s184_s22 = smov 128  }
   0x6   :  { %s28_s21 = sshll.u32 %s183_s20, 4  ;;  %s185_s23 = smov 8   ;;  %s29_s21 = int_to_ptr.vmem [resolvable:$true] %s28_s21 }
   0x7   :  { %34 = dma.hbm_to_vmem [thread:$0]  %s27_s19, 512, %s29_s21, [#allocation6], %s184_s22, %s184_s22, %s185_s23  }
   0x8   :  { %176 = dma.done.wait [#allocation3], 128  }
   0x9   :  { %177 = vsyncadd [#allocation3], 4294967168 }
   0xa   :  { %178 = dma.done.wait [#allocation6], 512  }
   0xb   :  { %179 = vsyncadd [#allocation6], 4294966784  ;;  %v49_v0 = vld [vmem:[#allocation5 + $0x18] sm:$0xff]  ;;  %v48_v1 = vld [vmem:[#allocation5 + $0x10] sm:$0xff]  ;;  %vm54_vm0 = vcmask 261120   ;;  %s186_s24 = smov [#allocation7]  }
   0xc   :  { %70 = vmatpush.msra.mxu0 %v49_v0  ;;  %v47_v2 = vld [vmem:[#allocation5 + $0x8] sm:$0xff]  ;;  %v46_v3 = vld [vmem:[#allocation5] sm:$0xff]  ;;  %v45_v4 = vld [vmem:[#allocation2] sm:$0xff]  ;;  %s84_s25 = sshll.u32 %s186_s24, 4  ;;  %s86_s28 = sshll.u32 %s222_s3, 4  ;;  %s85_s25 = int_to_ptr.vmem [resolvable:$true] %s84_s25  ;;  %s87_s28 = int_to_ptr.hbm [resolvable:$true] %s86_s28 }
   0xd   :  { %v103_v5 = vld [vmem:[%s221_s2] ss:$0 sm:$0xff] }
   0xe   :  { %71 = vmatpush.msra.mxu0 %v48_v1 }
  0x10   :  { %72 = vmatpush.msra.mxu0 %v47_v2 }
  0x12   :  { %73 = vmatpush.msra.mxu0 %v46_v3 }
  0x13   :  { %97 = vmatmul.msk.f32.vlgmr.msra.gmra.mxu0 %vm54_vm0, %v45_v4 }
  0x90   :  { %v75_v6 = vpop.f32.mrf.mxu0 }
  0x91   :  { %v76_v7 = vadd.f32 %v103_v5, %v75_v6 }
  0x93   :  { %78 = vst [vmem:[#allocation7] sm:$0xff] %v76_v7 }
  0x94   :  { %89 = dma.vmem_to_hbm [thread:$0]  %s85_s25, 128, %s87_s28, [#allocation4]  }
  0x95   :  { %180 = dma.done.wait [#allocation4], 128  }
  0x96   :  { %181 = vsyncadd [#allocation4], 4294967168 }
  0x97   :  { %94 = vsyncpa [#allocation3], 1 }
  0x98   :  { %95 = vsyncpa [#allocation6], 1 }
  0x99   :  { %96 = vsyncpa [#allocation4], 1 }

</bundles_post_ra>
